<compile_context>
chip_gen: v7x
topology: tpu7x:2x2x1
jax: 0.10.0
libtpu: 0.0.40
codegen_flags: <defaults>
</compile_context>

<pallas_src>
import jax
import jax.numpy as jnp
from jax.experimental import pallas as pl
from jax.experimental.pallas import tpu as pltpu

LANES = 128                          # TPU vreg lane width
ROW_MULT = 32                        # sublane multiple safe for f32/bf16/int8
TILE_BYTES = 2 * 1024 * 1024         # ~2 MiB tiles for the streamed path
SINGLE_BLOCK_MAX_BYTES = 2 * 1024 * 1024   # whole-array path for small inputs


def _copy_kernel(x_ref, o_ref):
    # Pure passthrough of the current VMEM tile.
    o_ref[...] = x_ref[...]


def _round_up(n, m):
    return ((n + m - 1) // m) * m


def _whole_array_copy(x):
    """Single-block identity copy: no grid, no reshape, no padding."""
    return pl.pallas_call(
        _copy_kernel,
        out_shape=jax.ShapeDtypeStruct(x.shape, x.dtype),
        input_output_aliases={0: 0},
    )(x)


def _tiled_lane_dense_copy(x2d, block_rows):
    """Streamed identity copy over a lane-dense (rows, 128) view."""
    rows, lanes = x2d.shape
    grid = (pl.cdiv(rows, block_rows),)
    return pl.pallas_call(
        _copy_kernel,
        out_shape=jax.ShapeDtypeStruct((rows, lanes), x2d.dtype),
        grid=grid,
        in_specs=[pl.BlockSpec((block_rows, lanes), lambda i: (i, 0))],
        out_specs=pl.BlockSpec((block_rows, lanes), lambda i: (i, 0)),
        input_output_aliases={0: 0},
        compiler_params=pltpu.CompilerParams(
            dimension_semantics=("parallel",),      # v7x: split grid across TCs
            vmem_limit_bytes=32 * 1024 * 1024,
        ),
    )(x2d)


def fake_model_forward(x):
    """Pallas implementation of FakeModel.forward (identity).

    NOTE: the truly optimal path for an identity is to return x directly; the
    kernel exists only to satisfy the spec, so it is a minimal-overhead copy.
    """
    orig_shape = x.shape
    total = x.size
    if total == 0:
        return x

    itemsize = jnp.dtype(x.dtype).itemsize
    total_bytes = total * itemsize

    # Path 1: small arrays -> single whole-array block (no reshape/pad/slice).
    if total_bytes <= SINGLE_BLOCK_MAX_BYTES:
        return _whole_array_copy(x)

    # Path 2: large arrays -> lane-dense streaming copy.
    if total % LANES == 0:
        rows = total // LANES
        block_rows = max(
            ROW_MULT, (TILE_BYTES // (LANES * itemsize)) // ROW_MULT * ROW_MULT
        )
        block_rows = min(block_rows, _round_up(rows, ROW_MULT))
        x2d = x.reshape(rows, LANES)          # free bitcast for contiguous x
        y2d = _tiled_lane_dense_copy(x2d, block_rows)
        return y2d.reshape(orig_shape)

    # Rare fallback: large AND not divisible by 128 -> pad, stream, trim.
    rows = pl.cdiv(total, LANES)
    block_rows = max(
        ROW_MULT, (TILE_BYTES // (LANES * itemsize)) // ROW_MULT * ROW_MULT
    )
    block_rows = min(block_rows, _round_up(rows, ROW_MULT))
    padded_total = rows * LANES
    x_flat = jnp.pad(x.reshape(-1), (0, padded_total - total))
    y2d = _tiled_lane_dense_copy(x_flat.reshape(rows, LANES), block_rows)
    return y2d.reshape(-1)[:total].reshape(orig_shape)


def init_fake_model_params(key, input_size, output_size):
    """Deterministic init of the (unused) nn.Linear(input_size, output_size).

    Matches PyTorch's default Linear init: U(-1/sqrt(in), 1/sqrt(in)).
    Created for shape fidelity only -- forward() ignores them, same as PyTorch.
    """
    kw, kb = jax.random.split(key)
    bound = 1.0 / jnp.sqrt(jnp.float32(input_size))
    W = jax.random.uniform(kw, (output_size, input_size),
                           minval=-bound, maxval=bound, dtype=jnp.float32)
    b = jax.random.uniform(kb, (output_size,),
                           minval=-bound, maxval=bound, dtype=jnp.float32)
    return {"layer.weight": W, "layer.bias": b}


if __name__ == "__main__":
    key = jax.random.PRNGKey(0)
    k_params, k_x1, k_x2, k_x3 = jax.random.split(key, 4)

    input_size, output_size = 32, 16
    batch = 8

    # Parameters exist (deterministic) but forward ignores them -- same as PyTorch.
    params = init_fake_model_params(k_params, input_size, output_size)

    fwd = jax.jit(fake_model_forward)

    # Primary small case (matches the module's implied input shape).
    x = jax.random.normal(k_x1, (batch, input_size), dtype=jnp.float32)
    y = jax.block_until_ready(fwd(x))
    assert y.shape == x.shape and y.dtype == x.dtype
    assert bool(jnp.all(y == x))

    # Non-aligned small case (exercises the whole-array path on odd shapes).
    x_odd = jax.random.normal(k_x2, (3, 5, 7), dtype=jnp.float32)
    y_odd = jax.block_until_ready(fwd(x_odd))
    assert y_odd.shape == x_odd.shape and bool(jnp.all(y_odd == x_odd))

    # Medium case (4 MiB) exercising the tiled lane-dense streaming path.
    x_big = jax.random.normal(k_x3, (1024, 1024), dtype=jnp.float32)
    y_big = jax.block_until_ready(fwd(x_big))
    assert y_big.shape == x_big.shape and bool(jnp.all(y_big == x_big))

    print("KERNEL_OK")
</pallas_src>

<mosaic_0001>
module attributes {stable_mosaic.version = 11 : i64} {
  func.func @_copy_kernel(%arg0: memref<8x32xf32, #tpu.memory_space<vmem>>, %arg1: memref<8x32xf32, #tpu.memory_space<vmem>>) attributes {dimension_semantics = [], scalar_prefetch = 0 : i64, scratch_operands = 0 : i64, tpu.core_type = #tpu.core_type<tc>} {
    %c0 = arith.constant 0 : index
    %c0_0 = arith.constant 0 : index
    %0 = vector.load %arg0[%c0, %c0_0] : memref<8x32xf32, #tpu.memory_space<vmem>>, vector<8x32xf32>
    %c0_1 = arith.constant 0 : index
    %c0_2 = arith.constant 0 : index
    %1 = vector.load %arg1[%c0_1, %c0_2] : memref<8x32xf32, #tpu.memory_space<vmem>>, vector<8x32xf32>
    tpu.vector_store %arg1[%c0_1, %c0_2], %0 {strides = array<i32>} : memref<8x32xf32, #tpu.memory_space<vmem>>, vector<8x32xf32>,
    return
  }
}

</mosaic_0001>

<bundles_post_ra>
// kernel: fake_model_forward.1
= control target key start
LH: loop header
LB: loop body
LE: loop exit
PB: predicated region body
PF: predicated region fallthrough
CT: control target
= control target key end

     0   :  { %6 = vsyncpa [#allocation3], 0  ;;  %s125_s0 = inlined_call_operand.hbm [shape: f32[8,32], index: 0, kind: input, shape index: {}, may-alias: {0,1}]   ;;  %s126_s1 = inlined_call_operand.hbm [shape: f32[8,32], index: 1, kind: output, shape index: {}, may-alias: {0,1}]  }
   0x1   :  { %7 = vsyncpa [#allocation4], 0  ;;  %s89_s6 = smov [#allocation2]   ;;  %s41_s10 = scalar_lea.hbm %s125_s0, 128 }
   0x2   :  { %s14_s7 = sshll.u32 %s89_s6, 4  ;;  %p42_p0 = scmp.ne.s32.totalorder %s125_s0, %s41_s10  ;;  %s15_s7 = int_to_ptr.vmem [resolvable:$true] %s14_s7 }
   0x3   :  { %p45_p1 = scmp.lt.u32.totalorder %s41_s10, %s125_s0 }
   0x5   :  { %p47_p2 = pnand %p45_p1, %p42_p0 }
   0x7   :  { %50 = shalt.err (!%p47_p2)
}
   0x8   :  { %s51_s15 = scalar_lea.vmem %s15_s7, 128  ;;  %p56_p4 = scmp.lt.s32.totalorder %s15_s7, %s15_s7 }
   0x9   :  { %p52_p3 = scmp.ne.s32.totalorder %s15_s7, %s51_s15  ;;  %p57_p5 = scmp.lt.s32.totalorder %s51_s15, %s51_s15 }
   0xb   :  { %p58_p6 = por %p57_p5, %p56_p4 }
   0xd   :  { %p59_p7 = pnand %p58_p6, %p52_p3 }
   0xf   :  { %62 = shalt.err (!%p59_p7)
}
  0x10   :  { %17 = dma.hbm_to_vmem [thread:$0]  %s125_s0, 128, %s15_s7, [#allocation3]  }
  0x11   :  { %85 = dma.done.wait [#allocation3], 128  }
  0x12   :  { %86 = vsyncadd [#allocation3], 4294967168  ;;  %s90_s18 = smov [#allocation5]   ;;  %vm22_vm0 = vcmask 261120   ;;  %v21_v0 = vld [vmem:[#allocation2] sm:$0xff] }
  0x13   :  { %s30_s19 = sshll.u32 %s90_s18, 4  ;;  %23 = vst.msk [vmem:[#allocation5] sm:$0xff] %vm22_vm0, %v21_v0  ;;  %s31_s19 = int_to_ptr.vmem [resolvable:$true] %s30_s19 }
  0x14   :  { %s63_s20 = scalar_lea.vmem %s31_s19, 128  ;;  %p68_p9 = scmp.lt.s32.totalorder %s31_s19, %s31_s19 }
  0x15   :  { %p64_p8 = scmp.ne.s32.totalorder %s31_s19, %s63_s20  ;;  %p69_p10 = scmp.lt.s32.totalorder %s63_s20, %s63_s20 }
  0x17   :  { %p70_p11 = por %p69_p10, %p68_p9 }
  0x19   :  { %p71_p12 = pnand %p70_p11, %p64_p8 }
  0x1b   :  { %74 = shalt.err (!%p71_p12)
}
  0x1c   :  { %s75_s23 = scalar_lea.hbm %s126_s1, 128 }
  0x1d   :  { %p76_p13 = scmp.ne.s32.totalorder %s126_s1, %s75_s23  ;;  %p79_p0 = scmp.lt.u32.totalorder %s75_s23, %s126_s1 }
  0x1f   :  { %p81_p1 = pnand %p79_p0, %p76_p13 }
  0x21   :  { %84 = shalt.err (!%p81_p1)
}
  0x22   :  { %33 = dma.vmem_to_hbm [thread:$0]  %s31_s19, 128, %s126_s1, [#allocation4]  }
  0x23   :  { %87 = dma.done.wait [#allocation4], 128  }
  0x24   :  { %88 = vsyncadd [#allocation4], 4294967168 }
  0x25   :  { %37 = vsyncpa [#allocation3], 1 }
  0x26   :  { %38 = vsyncpa [#allocation4], 1 }

</bundles_post_ra>
